<compile_context>
chip_gen: v7x
topology: tpu7x:2x2x1
jax: 0.10.0
libtpu: 0.0.40
codegen_flags: <defaults>
</compile_context>

<pallas_src>
import functools

import jax
import jax.numpy as jnp
from jax.experimental import pallas as pl
from jax.experimental.pallas import tpu as pltpu

_BIG = 1.0e12

# VMEM sizing: budget for (double-buffered DMA tiles + in-kernel f32 temps),
# plus the explicit scoped-VMEM limit handed to Mosaic.
_VMEM_WORK_BUDGET = 20 * 1024 * 1024
_VMEM_LIMIT_BYTES = 32 * 1024 * 1024


def _logsumexp_with_zero(v):
    """logsumexp over the last axis with an implicit extra 0.0 entry.

    Equivalent to torch.cat((v, zeros), -1).logsumexp(-1); returns keepdims
    (tile_b, 1) so row statistics stay 2-D.  `v` must be f32.
    """
    m = jnp.maximum(jnp.max(v, axis=-1, keepdims=True), 0.0)
    s = jnp.sum(jnp.exp(v - m), axis=-1, keepdims=True) + jnp.exp(-m)
    return m + jnp.log(s)


def _mlcce_kernel(x_ref, t_ref, loss_ref, *, normalization):
    x = x_ref[...]
    t = t_ref[...]

    # 0/1 mask compare on the native target dtype; never materialize t as f32.
    if jnp.issubdtype(t.dtype, jnp.floating):
        pos_mask = t > jnp.asarray(0.5, t.dtype)
    else:
        pos_mask = t.astype(jnp.int32) != 0

    if normalization:
        xf = x.astype(jnp.float32)
        x_max = jnp.max(xf, axis=-1, keepdims=True)
        e = jnp.exp(xf - x_max)
        z = jnp.sum(e, axis=-1, keepdims=True)
        p = e * (1.0 / z)  # exact per-row reciprocal: (tile_b, 1), negligible.
        neg_big = jnp.float32(-_BIG)
        # Post-softmax values are in [0, 1]; masked -1e12 entries underflow to
        # exactly 0 under exp, so logsumexp-with-zero reduces to
        # log(1 + sum(exp(v))) with no max pass needed.
        neg_in = jnp.where(pos_mask, neg_big, p)     # positive classes masked
        pos_in = jnp.where(pos_mask, -p, neg_big)    # negative classes masked
        neg_loss = jnp.log(1.0 + jnp.sum(jnp.exp(neg_in), -1, keepdims=True))
        pos_loss = jnp.log(1.0 + jnp.sum(jnp.exp(pos_in), -1, keepdims=True))
    else:
        big = jnp.asarray(-_BIG, x.dtype)   # representable in bf16 and f32
        # Build the masked branches directly (no y_pred temporary):
        #   y_neg = where(t==1, -BIG,  x)
        #   y_pos = where(t==1,  -x, -BIG)
        y_neg = jnp.where(pos_mask, big, x)
        y_pos = jnp.where(pos_mask, -x, big)
        neg_loss = _logsumexp_with_zero(y_neg.astype(jnp.float32))
        pos_loss = _logsumexp_with_zero(y_pos.astype(jnp.float32))

    loss_ref[...] = neg_loss + pos_loss              # (tile_b, 1)


def _sublane_align(dtype):
    """Sublane packing multiple for a dtype: f32 -> 8, bf16 -> 16, int8 -> 32."""
    itemsize = jnp.dtype(dtype).itemsize
    return 8 * max(1, 4 // itemsize)


def _choose_tile_b(batch, num_classes, x_dtype, t_dtype, normalization):
    """Biggest batch tile that keeps (DMA buffers + f32 working set) in budget."""
    align = max(_sublane_align(x_dtype), _sublane_align(t_dtype))
    isz_x = jnp.dtype(x_dtype).itemsize
    isz_t = jnp.dtype(t_dtype).itemsize
    # Double-buffered input DMA tiles plus the in-kernel f32 temporaries
    # (x_f32 / y_neg / y_pos / exp temps; the softmax path holds a couple more).
    n_f32_temps = 6 if normalization else 4
    bytes_per_row = num_classes * (2 * isz_x + 2 * isz_t + 4 * n_f32_temps)

    tb = int(_VMEM_WORK_BUDGET // max(bytes_per_row, 1))
    tb = max((tb // align) * align, align)
    # Never pad a small batch past the next aligned multiple.
    tb = min(tb, -(-batch // align) * align)
    tb = max(tb, align)
    # Keep >= 2 grid steps when the batch allows, so the "parallel" axis can
    # shard across both TensorCores on v7x.
    if tb >= batch and batch >= 2 * align:
        half = -(-batch // 2)
        tb = min(tb, align * (-(-half // align)))
    return tb


def multi_label_cce(inputs, targets, *, normalization=False, reduction="mean",
                    tile_b=None):
    """Pallas implementation of MultiLabelCCE.forward for 2-D (batch, classes).

    `targets` may be supplied in a narrow dtype (bf16 / int8) to cut HBM
    traffic; the kernel never materializes an f32 copy of it.
    """
    assert inputs.shape == targets.shape and inputs.ndim == 2
    B, C = inputs.shape

    if tile_b is None:
        tile_b = _choose_tile_b(B, C, inputs.dtype, targets.dtype,
                                normalization)
    assert tile_b % 8 == 0

    num_tiles = -(-B // tile_b)
    B_pad = num_tiles * tile_b
    if B_pad != B:
        pad = ((0, B_pad - B), (0, 0))
        inputs = jnp.pad(inputs, pad)
        targets = jnp.pad(targets, pad)

    kernel = functools.partial(_mlcce_kernel, normalization=normalization)

    # TODO(synk): if a profile shows exposed DMA after these changes, raise
    # input pipelining with pipeline_mode=pl.Buffered(3) (skip on v7x if VMEM
    # is tight).
    per_row = pl.pallas_call(
        kernel,
        out_shape=jax.ShapeDtypeStruct((B_pad, 1), jnp.float32),
        grid_spec=pltpu.PrefetchScalarGridSpec(
            num_scalar_prefetch=0,
            grid=(num_tiles,),
            in_specs=[
                pl.BlockSpec((tile_b, C), lambda i: (i, 0)),
                pl.BlockSpec((tile_b, C), lambda i: (i, 0)),
            ],
            out_specs=pl.BlockSpec((tile_b, 1), lambda i: (i, 0)),
        ),
        compiler_params=pltpu.CompilerParams(
            dimension_semantics=("parallel",),
            vmem_limit_bytes=_VMEM_LIMIT_BYTES),
    )(inputs, targets)

    per_row = per_row[:B, 0]
    if reduction == "mean":
        return jnp.mean(per_row)
    elif reduction == "sum":
        return jnp.sum(per_row)
    else:
        return per_row


def _reference(inputs, targets, normalization=False, reduction="mean"):
    x = jax.nn.softmax(inputs, axis=-1) if normalization else inputs
    t = targets.astype(jnp.float32)
    y_pred = (1.0 - 2.0 * t) * x
    y_pred_neg = y_pred - t * _BIG
    y_pred_pos = y_pred - (1.0 - t) * _BIG
    zeros = jnp.zeros_like(y_pred[..., :1])
    neg = jax.nn.logsumexp(jnp.concatenate([y_pred_neg, zeros], -1), axis=-1)
    pos = jax.nn.logsumexp(jnp.concatenate([y_pred_pos, zeros], -1), axis=-1)
    out = neg + pos
    if reduction == "mean":
        return jnp.mean(out)
    if reduction == "sum":
        return jnp.sum(out)
    return out


if __name__ == "__main__":
    key = jax.random.PRNGKey(0)
    k1, k2 = jax.random.split(key)

    B, C = 16, 128  # (batch, num_classes)
    inputs = jax.random.normal(k1, (B, C), dtype=jnp.float32)
    targets_f32 = (jax.random.uniform(k2, (B, C)) < 0.1).astype(jnp.float32)
    # Narrow HBM stream for the 0/1 mask: the kernel compares on the native
    # dtype and never builds an f32 copy.
    targets_bf16 = targets_f32.astype(jnp.bfloat16)

    # reduction='mean', no normalization.
    loss = multi_label_cce(inputs, targets_bf16, normalization=False,
                           reduction="mean")
    loss = jax.block_until_ready(loss)
    ref = _reference(inputs, targets_f32, normalization=False,
                     reduction="mean")
    assert jnp.allclose(loss, ref, rtol=1e-5, atol=1e-5), (loss, ref)

    # reduction='none'.
    loss_none = multi_label_cce(inputs, targets_bf16, reduction="none")
    ref_none = _reference(inputs, targets_f32, reduction="none")
    assert jnp.allclose(loss_none, ref_none, rtol=1e-5, atol=1e-5)

    # Ragged batch (exercises the padding path) + 'sum'.
    loss_sum = multi_label_cce(inputs[:13], targets_bf16[:13], reduction="sum")
    ref_sum = _reference(inputs[:13], targets_f32[:13], reduction="sum")
    assert jnp.allclose(loss_sum, ref_sum, rtol=1e-5, atol=1e-5)

    # int8 target stream (recommended caller contract on v5e/v6e: 1 B/elem).
    targets_i8 = targets_f32.astype(jnp.int8)
    loss_i8 = multi_label_cce(inputs, targets_i8, reduction="mean")
    assert jnp.allclose(loss_i8, ref, rtol=1e-5, atol=1e-5), (loss_i8, ref)

    # normalization=True (softmax path, exact per-row reciprocal).
    loss_n = multi_label_cce(inputs, targets_bf16, normalization=True,
                             reduction="mean")
    ref_n = _reference(inputs, targets_f32, normalization=True,
                       reduction="mean")
    assert jnp.allclose(loss_n, ref_n, rtol=1e-4, atol=1e-5), (loss_n, ref_n)

    jax.block_until_ready((loss_none, loss_sum, loss_i8, loss_n))
    print("KERNEL_OK")
</pallas_src>

<mosaic_0001>
module attributes {stable_mosaic.version = 11 : i64} {
  func.func @_mlcce_kernel(%arg0: i32, %arg1: memref<16x128xf32, #tpu.memory_space<vmem>>, %arg2: memref<16x128xbf16, #tpu.memory_space<vmem>>, %arg3: memref<16x1xf32, #tpu.memory_space<vmem>>) attributes {dimension_semantics = [#tpu.dimension_semantics<parallel>], iteration_bounds = array<i64: 1>, scalar_prefetch = 0 : i64, scratch_operands = 0 : i64, tpu.core_type = #tpu.core_type<tc>, window_params = [{transform_indices = @transform_0, window_bounds = array<i64: 16, 128>}, {transform_indices = @transform_1, window_bounds = array<i64: 16, 128>}, {transform_indices = @transform_2, window_bounds = array<i64: 16, 1>}]} {
    %c0 = arith.constant 0 : index
    %c0_0 = arith.constant 0 : index
    %0 = vector.load %arg1[%c0, %c0_0] : memref<16x128xf32, #tpu.memory_space<vmem>>, vector<16x128xf32>
    %c0_1 = arith.constant 0 : index
    %c0_2 = arith.constant 0 : index
    %1 = vector.load %arg2[%c0_1, %c0_2] : memref<16x128xbf16, #tpu.memory_space<vmem>>, vector<16x128xbf16>
    %cst = arith.constant 5.000000e-01 : bf16
    %2 = vector.broadcast %cst : bf16 to vector<16x128xbf16>
    %3 = arith.cmpf ogt, %1, %2 : vector<16x128xbf16>
    %cst_3 = arith.constant -9.99999995E+11 : f32
    %4 = vector.broadcast %cst_3 : f32 to vector<16x128xf32>
    %5 = arith.select %3, %4, %0 : vector<16x128xi1>, vector<16x128xf32>
    %cst_4 = arith.constant 0.000000e+00 : f32
    %6 = vector.broadcast %cst_4 : f32 to vector<16x128xf32>
    %7 = arith.subf %6, %0 : vector<16x128xf32>
    %cst_5 = arith.constant -9.99999995E+11 : f32
    %8 = vector.broadcast %cst_5 : f32 to vector<16x128xf32>
    %9 = arith.select %3, %7, %8 : vector<16x128xi1>, vector<16x128xf32>
    %cst_6 = arith.constant dense<0xFF800000> : vector<16xf32>
    %10 = vector.multi_reduction <maximumf>, %5, %cst_6 [1] : vector<16x128xf32> to vector<16xf32>
    %11 = vector.shape_cast %10 : vector<16xf32> to vector<16x1xf32>
    %cst_7 = arith.constant 0.000000e+00 : f32
    %12 = vector.broadcast %cst_7 : f32 to vector<16x1xf32>
    %13 = arith.maximumf %11, %12 : vector<16x1xf32>
    %14 = vector.broadcast %13 : vector<16x1xf32> to vector<16x128xf32>
    %15 = arith.subf %5, %14 : vector<16x128xf32>
    %16 = math.exp %15 : vector<16x128xf32>
    %cst_8 = arith.constant dense<0.000000e+00> : vector<16xf32>
    %17 = vector.multi_reduction <add>, %16, %cst_8 [1] : vector<16x128xf32> to vector<16xf32>
    %18 = vector.shape_cast %17 : vector<16xf32> to vector<16x1xf32>
    %cst_9 = arith.constant 0.000000e+00 : f32
    %19 = vector.broadcast %cst_9 : f32 to vector<16x1xf32>
    %20 = arith.subf %19, %13 : vector<16x1xf32>
    %21 = math.exp %20 : vector<16x1xf32>
    %22 = arith.addf %18, %21 : vector<16x1xf32>
    %23 = math.log %22 : vector<16x1xf32>
    %24 = arith.addf %13, %23 : vector<16x1xf32>
    %cst_10 = arith.constant dense<0xFF800000> : vector<16xf32>
    %25 = vector.multi_reduction <maximumf>, %9, %cst_10 [1] : vector<16x128xf32> to vector<16xf32>
    %26 = vector.shape_cast %25 : vector<16xf32> to vector<16x1xf32>
    %cst_11 = arith.constant 0.000000e+00 : f32
    %27 = vector.broadcast %cst_11 : f32 to vector<16x1xf32>
    %28 = arith.maximumf %26, %27 : vector<16x1xf32>
    %29 = vector.broadcast %28 : vector<16x1xf32> to vector<16x128xf32>
    %30 = arith.subf %9, %29 : vector<16x128xf32>
    %31 = math.exp %30 : vector<16x128xf32>
    %cst_12 = arith.constant dense<0.000000e+00> : vector<16xf32>
    %32 = vector.multi_reduction <add>, %31, %cst_12 [1] : vector<16x128xf32> to vector<16xf32>
    %33 = vector.shape_cast %32 : vector<16xf32> to vector<16x1xf32>
    %cst_13 = arith.constant 0.000000e+00 : f32
    %34 = vector.broadcast %cst_13 : f32 to vector<16x1xf32>
    %35 = arith.subf %34, %28 : vector<16x1xf32>
    %36 = math.exp %35 : vector<16x1xf32>
    %37 = arith.addf %33, %36 : vector<16x1xf32>
    %38 = math.log %37 : vector<16x1xf32>
    %39 = arith.addf %28, %38 : vector<16x1xf32>
    %40 = arith.addf %24, %39 : vector<16x1xf32>
    %c0_14 = arith.constant 0 : index
    %c0_15 = arith.constant 0 : index
    %41 = vector.load %arg3[%c0_14, %c0_15] : memref<16x1xf32, #tpu.memory_space<vmem>>, vector<16x1xf32>
    tpu.vector_store %arg3[%c0_14, %c0_15], %40 {strides = array<i32>} : memref<16x1xf32, #tpu.memory_space<vmem>>, vector<16x1xf32>,
    return
  }
  func.func @transform_0(%arg0: i32) -> (i32, i32) {
    %c0_i32 = arith.constant 0 : i32
    %c0_i32_0 = arith.constant 0 : i32
    return %arg0, %c0_i32 : i32, i32
  }
  func.func @transform_1(%arg0: i32) -> (i32, i32) {
    %c0_i32 = arith.constant 0 : i32
    %c0_i32_0 = arith.constant 0 : i32
    return %arg0, %c0_i32 : i32, i32
  }
  func.func @transform_2(%arg0: i32) -> (i32, i32) {
    %c0_i32 = arith.constant 0 : i32
    %c0_i32_0 = arith.constant 0 : i32
    return %arg0, %c0_i32 : i32, i32
  }
}

</mosaic_0001>

<bundles_post_ra>
// kernel: tpu_custom_call.1
= control target key start
LH: loop header
LB: loop body
LE: loop exit
PB: predicated region body
PF: predicated region fallthrough
CT: control target
= control target key end

     0   :  { %7 = vsyncpa [#allocation3], 0  ;;  %s262_s0 = inlined_call_operand.hbm [shape: f32[16,128], index: 0, kind: input, shape index: {}]   ;;  %s263_s1 = inlined_call_operand.hbm [shape: bf16[16,128], index: 1, kind: input, shape index: {}]   ;;  %s264_s2 = inlined_call_operand.vmem [shape: f32[16,1], index: 2, kind: output, shape index: {}]  }
   0x1   :  { %8 = vsyncpa [#allocation5], 0  ;;  %s210_s9 = smov [#allocation2]   ;;  %s162_s13 = scalar_lea.hbm %s262_s0, 256 }
   0x2   :  { %s14_s10 = sshll.u32 %s210_s9, 4  ;;  %p163_p0 = scmp.ne.s32.totalorder %s262_s0, %s162_s13  ;;  %s15_s10 = int_to_ptr.vmem [resolvable:$true] %s14_s10 }
   0x3   :  { %p166_p1 = scmp.lt.u32.totalorder %s162_s13, %s262_s0 }
   0x5   :  { %p168_p2 = pnand %p166_p1, %p163_p0 }
   0x7   :  { %171 = shalt.err (!%p168_p2)
}
   0x8   :  { %s172_s18 = scalar_lea.vmem %s15_s10, 256  ;;  %p177_p4 = scmp.lt.s32.totalorder %s15_s10, %s15_s10 }
   0x9   :  { %p173_p3 = scmp.ne.s32.totalorder %s15_s10, %s172_s18  ;;  %p178_p5 = scmp.lt.s32.totalorder %s172_s18, %s172_s18 }
   0xb   :  { %p179_p6 = por %p178_p5, %p177_p4 }
   0xd   :  { %p180_p7 = pnand %p179_p6, %p173_p3 }
   0xf   :  { %183 = shalt.err (!%p180_p7)
}
  0x10   :  { %s211_s19 = smov 128   ;;  %s212_s20 = smov 8  }
  0x11   :  { %20 = dma.hbm_to_vmem [thread:$0]  %s262_s0, 256, %s15_s10, [#allocation3], %s211_s19, %s211_s19, %s212_s20  }
  0x12   :  { %s213_s23 = smov [#allocation4]   ;;  %s184_s27 = scalar_lea.hbm %s263_s1, 128 }
  0x13   :  { %s26_s24 = sshll.u32 %s213_s23, 4  ;;  %p185_p8 = scmp.ne.s32.totalorder %s263_s1, %s184_s27  ;;  %s27_s24 = int_to_ptr.vmem [resolvable:$true] %s26_s24 }
  0x14   :  { %p188_p9 = scmp.lt.u32.totalorder %s184_s27, %s263_s1 }
  0x16   :  { %p190_p10 = pnand %p188_p9, %p185_p8 }
  0x18   :  { %193 = shalt.err (!%p190_p10)
}
  0x19   :  { %s194_s4 = scalar_lea.vmem %s27_s24, 128  ;;  %p199_p12 = scmp.lt.s32.totalorder %s27_s24, %s27_s24 }
  0x1a   :  { %p195_p11 = scmp.ne.s32.totalorder %s27_s24, %s194_s4  ;;  %p200_p13 = scmp.lt.s32.totalorder %s194_s4, %s194_s4 }
  0x1c   :  { %p201_p0 = por %p200_p13, %p199_p12 }
  0x1e   :  { %p202_p1 = pnand %p201_p0, %p195_p11 }
  0x20   :  { %205 = shalt.err (!%p202_p1)
}
  0x21   :  { %s214_s0 = smov 64   ;;  %s215_s5 = smov 4  }
  0x22   :  { %32 = dma.hbm_to_vmem [thread:$0]  %s263_s1, 128, %s27_s24, [#allocation5], %s214_s0, %s214_s0, %s215_s5  }
  0x23   :  { %206 = dma.done.wait [#allocation3], 256  }
  0x24   :  { %207 = vsyncadd [#allocation3], 4294967040 }
  0x25   :  { %208 = dma.done.wait [#allocation5], 128  }
  0x26   :  { %209 = vsyncadd [#allocation5], 4294967168  ;;  %v44_v0 = vld [vmem:[#allocation4] sm:$0xf]  ;;  %v42_v1 = vld [vmem:[#allocation2] sm:$0xff]  ;;  %v216_v3 = vmov 0  }
  0x27   :  { %vm46_vm0 = vcmp.gt.bf16.partialorder %v44_v0, 1056980736  ;;  %v45_v2 = vld [vmem:[#allocation4 + $0x4] sm:$0xf]  ;;  %v56_v5 = vsub.f32 0.0, %v42_v1  ;;  %v43_v7 = vld [vmem:[#allocation2 + $0x8] sm:$0xff] }
  0x28   :  { %v48_v4 = vsel %vm46_vm0, 65537, %v216_v3  ;;  %vm47_vm1 = vcmp.gt.bf16.partialorder %v45_v2, 1056980736  ;;  %v57_v10 = vsub.f32 0.0, %v43_v7  ;;  %vm122_vm4 = vcmask 7168  }
  0x29   :  { %v50_v6 = vunpack.c.l.b16 %v48_v4  ;;  %v49_v8 = vsel %vm47_vm1, 65537, %v216_v3 }
  0x2a   :  { %v51_v9 = vunpack.c.l.b16 %v49_v8 }
  0x2b   :  { %vm52_vm2 = vcmp.ne.s32.totalorder %v50_v6, 0 }
  0x2c   :  { %v54_v11 = vsel %vm52_vm2, -1e+12, %v42_v1  ;;  %v58_v12 = vsel %vm52_vm2, %v56_v5, -1e+12  ;;  %vm53_vm3 = vcmp.ne.s32.totalorder %v51_v9, 0 }
  0x2d   :  { %60 = vmax.xlane.f32.xlu0 %v54_v11  ;;  %90 = vmax.xlane.f32.xlu1 %v58_v12  ;;  %v55_v13 = vsel %vm53_vm3, -1e+12, %v43_v7  ;;  %v59_v14 = vsel %vm53_vm3, %v57_v10, -1e+12 }
  0x31   :  { %62 = vmax.xlane.f32.xlu0 %v55_v13  ;;  %92 = vmax.xlane.f32.xlu1 %v59_v14 }
  0xba   :  { %v61_v15 = vpop.xlane.xlu0 %60  ;;  %v91_v16 = vpop.xlane.xlu1 %90 }
  0xbb   :  { %v64_v17 = vmax.f32 %v61_v15, 0.0  ;;  %v94_v18 = vmax.f32 %v91_v16, 0.0 }
  0xbd   :  { %v66_v19 = vsub.f32 %v54_v11, %v64_v17  ;;  %v96_v20 = vsub.f32 %v58_v12, %v94_v18  ;;  %v76_v35 = vsub.f32 0.0, %v64_v17  ;;  %v106_v37 = vsub.f32 0.0, %v94_v18 }
  0xbe   :  { %v63_v21 = vpop.xlane.xlu0 %62  ;;  %v93_v22 = vpop.xlane.xlu1 %92 }
  0xbf   :  { %v68_v23 = vmul.f32 1.442695, %v66_v19  ;;  %v98_v24 = vmul.f32 1.442695, %v96_v20  ;;  %v65_v25 = vmax.f32 %v63_v21, 0.0  ;;  %v95_v26 = vmax.f32 %v93_v22, 0.0 }
  0xc0   :  { %v78_v36 = vmul.f32 1.442695, %v76_v35  ;;  %v108_v39 = vmul.f32 1.442695, %v106_v37 }
  0xc1   :  { %138 = vpow2.f32 %v68_v23  ;;  %v67_v27 = vsub.f32 %v55_v13, %v65_v25  ;;  %v97_v28 = vsub.f32 %v59_v14, %v95_v26  ;;  %v77_v38 = vsub.f32 0.0, %v65_v25 }
  0xc2   :  { %140 = vpow2.f32 %v98_v24  ;;  %v107_v41 = vsub.f32 0.0, %v95_v26 }
  0xc3   :  { %v70_v29 = vmul.f32 1.442695, %v67_v27  ;;  %v100_v30 = vmul.f32 1.442695, %v97_v28  ;;  %v80_v40 = vmul.f32 1.442695, %v77_v38 }
  0xc4   :  { %v110_v42 = vmul.f32 1.442695, %v107_v41 }
  0xc5   :  { %142 = vpow2.f32 %v70_v29 }
  0xc6   :  { %144 = vpow2.f32 %v100_v30 }
  0xc7   :  { %146 = vpow2.f32 %v78_v36 }
  0xc8   :  { %148 = vpow2.f32 %v108_v39 }
  0xc9   :  { %150 = vpow2.f32 %v80_v40 }
  0xca   :  { %152 = vpow2.f32 %v110_v42 }
  0xcb   :  { %v139_v31 = vpop.eup %138 }
  0xcc   :  { %72 = vadd.xlane.f32.xlu0 %v139_v31  ;;  %v141_v32 = vpop.eup %140 }
  0xcf   :  { %v143_v33 = vpop.eup %142 }
  0xd0   :  { %102 = vadd.xlane.f32.xlu0 %v141_v32  ;;  %74 = vadd.xlane.f32.xlu1 %v143_v33  ;;  %v145_v34 = vpop.eup %144 }
  0xd1   :  { %v147_v43 = vpop.eup %146 }
  0xd2   :  { %v149_v46 = vpop.eup %148 }
  0xd3   :  { %v151_v48 = vpop.eup %150 }
  0xd4   :  { %104 = vadd.xlane.f32.xlu1 %v145_v34  ;;  %v153_v52 = vpop.eup %152 }
 0x159   :  { %v73_v44 = vpop.xlane.xlu0 %72 }
 0x15a   :  { %v82_v45 = vadd.f32 %v147_v43, %v73_v44 }
 0x15c   :  { %154 = vlog2.f32 %v82_v45 }
 0x15d   :  { %v103_v47 = vpop.xlane.xlu0 %102  ;;  %v75_v49 = vpop.xlane.xlu1 %74 }
 0x15e   :  { %v112_v50 = vadd.f32 %v149_v46, %v103_v47  ;;  %v83_v51 = vadd.f32 %v151_v48, %v75_v49 }
 0x160   :  { %156 = vlog2.f32 %v112_v50 }
 0x161   :  { %158 = vlog2.f32 %v83_v51  ;;  %v105_v53 = vpop.xlane.xlu1 %104 }
 0x162   :  { %v113_v54 = vadd.f32 %v153_v52, %v105_v53 }
 0x164   :  { %160 = vlog2.f32 %v113_v54 }
 0x166   :  { %v155_v55 = vpop.eup %154 }
 0x167   :  { %v85_v56 = vmul.f32 0.6931472, %v155_v55 }
 0x169   :  { %v88_v60 = vadd.f32 %v85_v56, %v64_v17 }
 0x16a   :  { %v157_v57 = vpop.eup %156 }
 0x16b   :  { %v159_v58 = vpop.eup %158  ;;  %v115_v59 = vmul.f32 0.6931472, %v157_v57 }
 0x16c   :  { %v87_v62 = vmul.f32 0.6931472, %v159_v58 }
 0x16d   :  { %v118_v61 = vadd.f32 %v115_v59, %v94_v18 }
 0x16e   :  { %v161_v63 = vpop.eup %160  ;;  %v89_v2 = vadd.f32 %v87_v62, %v65_v25 }
 0x16f   :  { %v120_v0 = vadd.f32 %v118_v61, %v88_v60  ;;  %v117_v1 = vmul.f32 0.6931472, %v161_v63 }
 0x171   :  { %123 = vst.msk [vmem:[%s264_s2] sm:$0xff] %vm122_vm4, %v120_v0  ;;  %v119_v3 = vadd.f32 %v117_v1, %v95_v26 }
 0x173   :  { %v121_v4 = vadd.f32 %v119_v3, %v89_v2 }
 0x175   :  { %124 = vst.msk [vmem:[%s264_s2 + $0x8] sm:$0xff] %vm122_vm4, %v121_v4 }
 0x176   :  { %129 = vsyncpa [#allocation3], 1 }
 0x177   :  { %130 = vsyncpa [#allocation5], 1 }

</bundles_post_ra>
